<compile_context>
chip_gen: v5e
topology: v5e:2x2
jax: 0.10.0
libtpu: 0.0.40
codegen_flags: <defaults>
</compile_context>

<pallas_src>
import jax
import jax.numpy as jnp
from jax.experimental import pallas as pl
from jax.experimental.pallas import tpu as pltpu


def _keypoint_loss_kernel(data_ref, area_ref, sig_ref, out_ref):
    # data_ref block: [5, K, TILE_N]
    px = data_ref[0]            # [K, TILE_N]
    py = data_ref[1]
    gx = data_ref[2]
    gy = data_ref[3]
    mask = data_ref[4]          # 0.0 / 1.0 floats (wrapper contract)
    area = area_ref[...]        # [1, TILE_N]
    sig = sig_ref[...]          # [K, 1]

    k = px.shape[0]

    # Squared euclidean distance per keypoint.
    dx = px - gx
    dy = py - gy
    d = dx * dx + dy * dy                                   # [K, TILE_N]

    # kpt_loss_factor = K / (sum_k(mask != 0) + 1e-9)  (mask is already 0/1)
    mask_sum = jnp.sum(mask, axis=0, keepdims=True)         # [1, TILE_N]
    kpt_loss_factor = float(k) / (mask_sum + 1e-9)          # one vector divide

    # e = d / ((2*sigma)^2 * (area + 1e-9) * 2) = d * (1/(8*sigma^2)) * (1/(area+1e-9))
    inv_sig = 1.0 / (8.0 * sig * sig)                       # [K, 1]   one vector divide
    inv_area = 1.0 / (area + 1e-9)                          # [1, N]   one vector divide
    e = d * inv_sig * inv_area                              # [K, TILE_N]

    contrib = (1.0 - jnp.exp(-e)) * mask                    # [K, TILE_N]
    # Per-object (per-lane) partial sum, lane-dense output.
    out_ref[...] = kpt_loss_factor * jnp.sum(contrib, axis=0, keepdims=True)


def keypoint_loss(pred_kpts, gt_kpts, kpt_mask, area, sigmas, *, tile_n=128):
    """pred_kpts/gt_kpts: [N, K, 3] f32, kpt_mask: [N, K] bool or 0/1 float,
    area: [N, 1] f32, sigmas: [K] f32.  Returns scalar f32 loss (mean)."""
    n, k, _ = pred_kpts.shape

    # Transpose to lane-dense [channel, K, N] layout and consolidate operands.
    pred_t = jnp.transpose(pred_kpts[..., :2].astype(jnp.float32), (2, 1, 0))  # [2,K,N]
    gt_t = jnp.transpose(gt_kpts[..., :2].astype(jnp.float32), (2, 1, 0))      # [2,K,N]
    mask_t = kpt_mask.astype(jnp.float32).T[None]                              # [1,K,N]
    data = jnp.concatenate([pred_t, gt_t, mask_t], axis=0)                     # [5,K,N]
    area_t = area.astype(jnp.float32).reshape(1, n)                            # [1,N]
    sig = sigmas.astype(jnp.float32).reshape(k, 1)                             # [K,1]

    # Pad N up to a multiple of tile_n (padded columns contribute exactly 0).
    n_pad = ((n + tile_n - 1) // tile_n) * tile_n
    num_tiles = n_pad // tile_n
    if n_pad != n:
        data = jnp.pad(data, ((0, 0), (0, 0), (0, n_pad - n)))
        area_t = jnp.pad(area_t, ((0, 0), (0, n_pad - n)))

    partial = pl.pallas_call(
        _keypoint_loss_kernel,
        out_shape=jax.ShapeDtypeStruct((num_tiles, tile_n), jnp.float32),
        grid=(num_tiles,),
        in_specs=[
            pl.BlockSpec((5, k, tile_n), lambda i: (0, 0, i)),   # data
            pl.BlockSpec((1, tile_n), lambda i: (0, i)),         # area
            pl.BlockSpec((k, 1), lambda i: (0, 0)),              # sigmas
        ],
        out_specs=pl.BlockSpec((1, tile_n), lambda i: (i, 0)),
        compiler_params=pltpu.CompilerParams(
            dimension_semantics=("parallel",)),
    )(data, area_t, sig)

    # Final reduction + mean normalization over the true (unpadded) N*K.
    return jnp.sum(partial) / float(n * k)


def keypoint_loss_ref(pred_kpts, gt_kpts, kpt_mask, area, sigmas):
    """Pure-JAX reference matching the PyTorch forward."""
    d = (pred_kpts[..., 0] - gt_kpts[..., 0]) ** 2 + (pred_kpts[..., 1] - gt_kpts[..., 1]) ** 2
    kpt_loss_factor = kpt_mask.shape[1] / (jnp.sum(kpt_mask != 0, axis=1) + 1e-9)
    e = d / ((2 * sigmas) ** 2 * (area + 1e-9) * 2)
    return jnp.mean(kpt_loss_factor.reshape(-1, 1) * ((1 - jnp.exp(-e)) * kpt_mask))


if __name__ == "__main__":
    key = jax.random.PRNGKey(0)
    k1, k2, k3, k4 = jax.random.split(key, 4)

    N, K = 128, 8  # N objects, K keypoints per object

    pred_kpts = jax.random.normal(k1, (N, K, 3), dtype=jnp.float32) * 4.0
    gt_kpts = jax.random.normal(k2, (N, K, 3), dtype=jnp.float32) * 4.0
    kpt_mask = (jax.random.uniform(k3, (N, K)) > 0.3)
    area = jax.random.uniform(k4, (N, 1), dtype=jnp.float32) * 10.0 + 1.0
    # Deterministic sigmas (OKS-style constants), shape [K]
    sigmas = (jnp.arange(1, K + 1, dtype=jnp.float32) / (K + 1)) * 0.1 + 0.025

    loss = keypoint_loss(pred_kpts, gt_kpts, kpt_mask.astype(jnp.float32), area, sigmas)
    jax.block_until_ready(loss)

    ref = keypoint_loss_ref(pred_kpts, gt_kpts, kpt_mask.astype(jnp.float32), area, sigmas)
    assert jnp.allclose(loss, ref, rtol=1e-5, atol=1e-6), (loss, ref)

    print("KERNEL_OK")
</pallas_src>

<mosaic_0001>
module attributes {stable_mosaic.version = 11 : i64} {
  func.func @_keypoint_loss_kernel(%arg0: i32, %arg1: memref<5x8x128xf32, #tpu.memory_space<vmem>>, %arg2: memref<1x128xf32, #tpu.memory_space<vmem>>, %arg3: memref<8x1xf32, #tpu.memory_space<vmem>>, %arg4: memref<1x128xf32, #tpu.memory_space<vmem>>) attributes {dimension_semantics = [#tpu.dimension_semantics<parallel>], iteration_bounds = array<i64: 1>, scalar_prefetch = 0 : i64, scratch_operands = 0 : i64, tpu.core_type = #tpu.core_type<tc>, window_params = [{transform_indices = @transform_0, window_bounds = array<i64: 5, 8, 128>}, {transform_indices = @transform_1, window_bounds = array<i64: 1, 128>}, {pipeline_mode = #tpu.pipeline_mode<synchronous>, transform_indices = @transform_2, window_bounds = array<i64: 8, 1>}, {transform_indices = @transform_3, window_bounds = array<i64: 1, 128>}]} {
    %c0 = arith.constant 0 : index
    %c0_0 = arith.constant 0 : index
    %c0_1 = arith.constant 0 : index
    %0 = vector.load %arg1[%c0, %c0_0, %c0_1] : memref<5x8x128xf32, #tpu.memory_space<vmem>>, vector<1x8x128xf32>
    %1 = vector.shape_cast %0 : vector<1x8x128xf32> to vector<8x128xf32>
    %c1 = arith.constant 1 : index
    %c0_2 = arith.constant 0 : index
    %c0_3 = arith.constant 0 : index
    %2 = vector.load %arg1[%c1, %c0_2, %c0_3] : memref<5x8x128xf32, #tpu.memory_space<vmem>>, vector<1x8x128xf32>
    %3 = vector.shape_cast %2 : vector<1x8x128xf32> to vector<8x128xf32>
    %c2 = arith.constant 2 : index
    %c0_4 = arith.constant 0 : index
    %c0_5 = arith.constant 0 : index
    %4 = vector.load %arg1[%c2, %c0_4, %c0_5] : memref<5x8x128xf32, #tpu.memory_space<vmem>>, vector<1x8x128xf32>
    %5 = vector.shape_cast %4 : vector<1x8x128xf32> to vector<8x128xf32>
    %c3 = arith.constant 3 : index
    %c0_6 = arith.constant 0 : index
    %c0_7 = arith.constant 0 : index
    %6 = vector.load %arg1[%c3, %c0_6, %c0_7] : memref<5x8x128xf32, #tpu.memory_space<vmem>>, vector<1x8x128xf32>
    %7 = vector.shape_cast %6 : vector<1x8x128xf32> to vector<8x128xf32>
    %c4 = arith.constant 4 : index
    %c0_8 = arith.constant 0 : index
    %c0_9 = arith.constant 0 : index
    %8 = vector.load %arg1[%c4, %c0_8, %c0_9] : memref<5x8x128xf32, #tpu.memory_space<vmem>>, vector<1x8x128xf32>
    %9 = vector.shape_cast %8 : vector<1x8x128xf32> to vector<8x128xf32>
    %c0_10 = arith.constant 0 : index
    %c0_11 = arith.constant 0 : index
    %10 = vector.load %arg2[%c0_10, %c0_11] : memref<1x128xf32, #tpu.memory_space<vmem>>, vector<1x128xf32>
    %c0_12 = arith.constant 0 : index
    %c0_13 = arith.constant 0 : index
    %11 = vector.load %arg3[%c0_12, %c0_13] : memref<8x1xf32, #tpu.memory_space<vmem>>, vector<8x1xf32>
    %12 = arith.subf %1, %5 : vector<8x128xf32>
    %13 = arith.subf %3, %7 : vector<8x128xf32>
    %14 = arith.mulf %12, %12 : vector<8x128xf32>
    %15 = arith.mulf %13, %13 : vector<8x128xf32>
    %16 = arith.addf %14, %15 : vector<8x128xf32>
    %cst = arith.constant dense<0.000000e+00> : vector<128xf32>
    %17 = vector.multi_reduction <add>, %9, %cst [0] : vector<8x128xf32> to vector<128xf32>
    %18 = vector.shape_cast %17 : vector<128xf32> to vector<1x128xf32>
    %cst_14 = arith.constant 9.99999971E-10 : f32
    %19 = vector.broadcast %cst_14 : f32 to vector<1x128xf32>
    %20 = arith.addf %18, %19 : vector<1x128xf32>
    %cst_15 = arith.constant 8.000000e+00 : f32
    %21 = vector.broadcast %cst_15 : f32 to vector<1x128xf32>
    %22 = arith.divf %21, %20 : vector<1x128xf32>
    %cst_16 = arith.constant 8.000000e+00 : f32
    %23 = vector.broadcast %cst_16 : f32 to vector<8x1xf32>
    %24 = arith.mulf %23, %11 : vector<8x1xf32>
    %25 = arith.mulf %24, %11 : vector<8x1xf32>
    %cst_17 = arith.constant 1.000000e+00 : f32
    %26 = vector.broadcast %cst_17 : f32 to vector<8x1xf32>
    %27 = arith.divf %26, %25 : vector<8x1xf32>
    %cst_18 = arith.constant 9.99999971E-10 : f32
    %28 = vector.broadcast %cst_18 : f32 to vector<1x128xf32>
    %29 = arith.addf %10, %28 : vector<1x128xf32>
    %cst_19 = arith.constant 1.000000e+00 : f32
    %30 = vector.broadcast %cst_19 : f32 to vector<1x128xf32>
    %31 = arith.divf %30, %29 : vector<1x128xf32>
    %32 = vector.broadcast %27 : vector<8x1xf32> to vector<8x128xf32>
    %33 = arith.mulf %16, %32 : vector<8x128xf32>
    %34 = vector.broadcast %31 : vector<1x128xf32> to vector<8x128xf32>
    %35 = arith.mulf %33, %34 : vector<8x128xf32>
    %cst_20 = arith.constant 0.000000e+00 : f32
    %36 = vector.broadcast %cst_20 : f32 to vector<8x128xf32>
    %37 = arith.subf %36, %35 : vector<8x128xf32>
    %38 = math.exp %37 : vector<8x128xf32>
    %cst_21 = arith.constant 1.000000e+00 : f32
    %39 = vector.broadcast %cst_21 : f32 to vector<8x128xf32>
    %40 = arith.subf %39, %38 : vector<8x128xf32>
    %41 = arith.mulf %40, %9 : vector<8x128xf32>
    %cst_22 = arith.constant dense<0.000000e+00> : vector<128xf32>
    %42 = vector.multi_reduction <add>, %41, %cst_22 [0] : vector<8x128xf32> to vector<128xf32>
    %43 = vector.shape_cast %42 : vector<128xf32> to vector<1x128xf32>
    %44 = arith.mulf %22, %43 : vector<1x128xf32>
    %c0_23 = arith.constant 0 : index
    %c0_24 = arith.constant 0 : index
    %45 = vector.load %arg4[%c0_23, %c0_24] : memref<1x128xf32, #tpu.memory_space<vmem>>, vector<1x128xf32>
    tpu.vector_store %arg4[%c0_23, %c0_24], %44 {strides = array<i32>} : memref<1x128xf32, #tpu.memory_space<vmem>>, vector<1x128xf32>,
    return
  }
  func.func @transform_0(%arg0: i32) -> (i32, i32, i32) {
    %c0_i32 = arith.constant 0 : i32
    %c0_i32_0 = arith.constant 0 : i32
    %c0_i32_1 = arith.constant 0 : i32
    return %c0_i32, %c0_i32_0, %arg0 : i32, i32, i32
  }
  func.func @transform_1(%arg0: i32) -> (i32, i32) {
    %c0_i32 = arith.constant 0 : i32
    %c0_i32_0 = arith.constant 0 : i32
    return %c0_i32, %arg0 : i32, i32
  }
  func.func @transform_2(%arg0: i32) -> (i32, i32) {
    %c0_i32 = arith.constant 0 : i32
    %c0_i32_0 = arith.constant 0 : i32
    %c0_i32_1 = arith.constant 0 : i32
    return %c0_i32, %c0_i32_0 : i32, i32
  }
  func.func @transform_3(%arg0: i32) -> (i32, i32) {
    %c0_i32 = arith.constant 0 : i32
    %c0_i32_0 = arith.constant 0 : i32
    return %arg0, %c0_i32 : i32, i32
  }
}

</mosaic_0001>

<bundles_post_ra>
// kernel: tpu_custom_call.1
= control target key start
LH: loop header
LB: loop body
LE: loop exit
PB: predicated region body
PF: predicated region fallthrough
CT: control target
= control target key end

     0   :  { %8 = vsyncpa [#allocation3], 0  ;;  %s245_s0 = inlined_call_operand.hbm [shape: f32[5,8,128], index: 0, kind: input, shape index: {}]   ;;  %s246_s1 = inlined_call_operand.vmem [shape: f32[1,128], index: 1, kind: input, shape index: {}]   ;;  %s247_s2 = inlined_call_operand.vmem [shape: f32[8,1], index: 2, kind: input, shape index: {}]   ;;  %s248_s3 = inlined_call_operand.hbm [shape: f32[1,128], index: 3, kind: output, shape index: {}]  }
   0x1   :  { %9 = vsyncpa [#allocation4], 0  ;;  %s14_s14 = sshll.u32 %s245_s0, 4  ;;  %s208_s15 = smov [#allocation2]   ;;  %s15_s14 = int_to_ptr.hbm [resolvable:$true] %s14_s14 }
   0x2   :  { %s16_s16 = sshll.u32 %s208_s15, 4  ;;  %s209_s17 = smov 128   ;;  %s17_s16 = int_to_ptr.vmem [resolvable:$true] %s16_s16 }
   0x3   :  { %s210_s18 = smov 8  }
   0x4   :  { %22 = dma.hbm_to_vmem [thread:$0]  %s15_s14, 640, %s17_s16, [#allocation3], %s209_s17, %s209_s17, %s210_s18  }
   0x5   :  { %204 = dma.done.wait [#allocation3], 640  }
   0x6   :  { %205 = vsyncadd [#allocation3], 4294966656  ;;  %v211_v0 = vmov 0   ;;  %v41_v1 = vld [vmem:[%s247_s2] sm:$0xff]  ;;  %v35_v25 = vld [vmem:[#allocation2 + $0x10] sm:$0xff]  ;;  %s132_s24 = sshll.u32 %s248_s3, 4  ;;  %s133_s24 = int_to_ptr.hbm [resolvable:$true] %s132_s24 }
   0x7   :  { %147 = vset.pattern.permute.xlu0 %v211_v0  ;;  %v69_v2 = vmul.f32 8.0, %v41_v1  ;;  %v40_v14 = vld [vmem:[%s246_s1] sm:$0x1]  ;;  %v33_v28 = vld [vmem:[#allocation2 + $0x8] sm:$0xff]  ;;  %v37_v29 = vld [vmem:[#allocation2 + $0x18] sm:$0xff]  ;;  %s212_s1 = smov [#allocation5]  }
   0x8   :  { %v86_v15 = vadd.f32 1e-09, %v40_v14  ;;  %v39_v16 = vld [vmem:[#allocation2 + $0x20] sm:$0xff]  ;;  %v43_v32 = vsub.f32 %v33_v28, %v37_v29  ;;  %s130_s21 = sshll.u32 %s212_s1, 4  ;;  %s131_s21 = int_to_ptr.vmem [resolvable:$true] %s130_s21 }
   0x9   :  { %v70_v3 = vmul.f32 %v69_v2, %v41_v1  ;;  %v47_v17 = vrot.slane %v39_v16, 4  ;;  %v31_v24 = vld [vmem:[#allocation2] sm:$0xff] }
   0xa   :  { %vm92_vm4 = vweird.f32 %v86_v15  ;;  %v42_v30 = vsub.f32 %v31_v24, %v35_v25  ;;  %v98_v31 = vand.u32 2147483648, %v86_v15  ;;  %v96_v35 = vand.u32 2147483647, %v86_v15 }
   0xb   :  { %148 = vrcp.f32 %v70_v3  ;;  %v82_v6 = vand.u32 2147483648, %v70_v3  ;;  %vm76_vm0 = vweird.f32 %v70_v3  ;;  %v80_v8 = vand.u32 2147483647, %v70_v3 }
   0xc   :  { %150 = vrcp.f32 %v86_v15  ;;  %v48_v18 = vadd.f32 %v47_v17, %v39_v16  ;;  %v44_v36 = vmul.f32 %v42_v30, %v42_v30  ;;  %v99_v37 = vor.u32 1.1754944e-38, %v98_v31 }
   0xd   :  { %v83_v10 = vor.u32 1.1754944e-38, %v82_v6  ;;  %vm81_vm3 = vcmp.eq.f32.partialorder %v80_v8, 8.507059e+37  ;;  %v45_v38 = vmul.f32 %v43_v32, %v43_v32  ;;  %vm97_vm7 = vcmp.eq.f32.partialorder %v96_v35, 8.507059e+37 }
   0xe   :  { %v49_v20 = vrot.slane %v48_v18, 2 }
   0xf   :  { %v46_v42 = vadd.f32 %v45_v38, %v44_v36 }
  0x10   :  { %v50_v22 = vadd.f32 %v49_v20, %v48_v18 }
  0x11   :  { %v149_v4 = vpop.eup %148 }
  0x12   :  { %v72_v5 = vmul.f32 %v149_v4, %v70_v3  ;;  %vm77_vm1 = vweird.f32 %v149_v4  ;;  %v151_v19 = vpop.eup %150  ;;  %v51_v26 = vrot.slane %v50_v22, 1 }
  0x13   :  { %vm78_vm2 = vmor %vm76_vm0, %vm77_vm1  ;;  %v88_v21 = vmul.f32 %v151_v19, %v86_v15  ;;  %vm93_vm5 = vweird.f32 %v151_v19 }
  0x14   :  { %v73_v7 = vsub.f32 1.0, %v72_v5  ;;  %v52_v33 = vadd.f32 %v51_v26, %v50_v22  ;;  %vm94_vm6 = vmor %vm92_vm4, %vm93_vm5 }
  0x15   :  { %v89_v23 = vsub.f32 1.0, %v88_v21 }
  0x16   :  { %v74_v9 = vmul.f32 %v149_v4, %v73_v7  ;;  %v53_v39 = vadd.f32 1e-09, %v52_v33 }
  0x17   :  { %v90_v27 = vmul.f32 %v151_v19, %v89_v23 }
  0x18   :  { %v75_v11 = vadd.f32 %v149_v4, %v74_v9  ;;  %152 = vrcp.f32 %v53_v39  ;;  %vm59_vm8 = vweird.f32 %v53_v39  ;;  %v65_v55 = vand.u32 2147483648, %v53_v39 }
  0x19   :  { %v91_v34 = vadd.f32 %v151_v19, %v90_v27  ;;  %v63_v58 = vand.u32 2147483647, %v53_v39 }
  0x1a   :  { %v79_v12 = vsel %vm78_vm2, %v149_v4, %v75_v11  ;;  %v66_v60 = vor.u32 1.1754944e-38, %v65_v55 }
  0x1b   :  { %v84_v13 = vsel %vm81_vm3, %v83_v10, %v79_v12  ;;  %v95_v40 = vsel %vm94_vm6, %v151_v19, %v91_v34  ;;  %vm64_vm11 = vcmp.eq.f32.partialorder %v63_v58, 8.507059e+37 }
  0x1c   :  { %104 = vperm.xlu0 %147, %v84_v13   ;;  %v100_v41 = vsel %vm97_vm7, %v99_v37, %v95_v40 }
  0x1d   :  { %v109_v43 = vperm.slane %v100_v41, 0 }
  0x1e   :  { %v153_v46 = vpop.eup %152 }
  0x1f   :  { %v55_v49 = vmul.f32 %v153_v46, %v53_v39  ;;  %vm60_vm9 = vweird.f32 %v153_v46 }
  0x20   :  { %vm61_vm10 = vmor %vm59_vm8, %vm60_vm9 }
  0x21   :  { %v56_v51 = vsub.f32 1.0, %v55_v49 }
  0x23   :  { %v57_v52 = vmul.f32 %v153_v46, %v56_v51 }
  0x25   :  { %v58_v57 = vadd.f32 %v153_v46, %v57_v52 }
  0x27   :  { %v62_v62 = vsel %vm61_vm10, %v153_v46, %v58_v57 }
  0x28   :  { %v67_v0 = vsel %vm64_vm11, %v66_v60, %v62_v62 }
  0x29   :  { %v68_v2 = vmul.f32 8.0, %v67_v0 }
  0x8e   :  { %v105_v44 = vpop.permute.xlu0 %104 }
  0x8f   :  { %v107_v45 = vmul.f32 %v105_v44, %v46_v42 }
  0x91   :  { %v111_v47 = vmul.f32 %v109_v43, %v107_v45 }
  0x93   :  { %v112_v48 = vsub.f32 0.0, %v111_v47 }
  0x95   :  { %v113_v50 = vmul.f32 1.442695, %v112_v48 }
  0x97   :  { %154 = vpow2.f32 %v113_v50 }
  0x9d   :  { %v155_v53 = vpop.eup %154 }
  0x9e   :  { %v115_v54 = vsub.f32 1.0, %v155_v53 }
  0xa0   :  { %v116_v56 = vmul.f32 %v115_v54, %v39_v16 }
  0xa2   :  { %v117_v59 = vrot.slane %v116_v56, 4 }
  0xa4   :  { %v118_v61 = vadd.f32 %v117_v59, %v116_v56 }
  0xa6   :  { %v119_v63 = vrot.slane %v118_v61, 2 }
  0xa8   :  { %v120_v1 = vadd.f32 %v119_v63, %v118_v61 }
  0xaa   :  { %v121_v3 = vrot.slane %v120_v1, 1 }
  0xac   :  { %v122_v4 = vadd.f32 %v121_v3, %v120_v1 }
  0xae   :  { %v123_v5 = vmul.f32 %v122_v4, %v68_v2 }
  0xb0   :  { %124 = vst [vmem:[#allocation5] sm:$0x1] %v123_v5 }
  0xb1   :  { %135 = dma.vmem_to_hbm [thread:$0]  %s131_s21, 16, %s133_s24, [#allocation4]  }
  0xb2   :  { %206 = dma.done.wait [#allocation4], 16  }
  0xb3   :  { %207 = vsyncadd [#allocation4], 4294967280 }
  0xb4   :  { %140 = vsyncpa [#allocation3], 1 }
  0xb5   :  { %141 = vsyncpa [#allocation4], 1 }

</bundles_post_ra>
